<compile_context>
chip_gen: v6e
topology: v6e:2x2x1
jax: 0.10.0
libtpu: 0.0.40
codegen_flags: <defaults>
</compile_context>

<pallas_src>
import functools
import math
import numpy as np

import jax
import jax.numpy as jnp
from jax.experimental import pallas as pl
from jax.experimental.pallas import tpu as pltpu

# ----------------------------- "cfg" constants -----------------------------
NUM_CLASSES = 20
NUM_BOX = 3
BBOX_ATTRS = 5 + NUM_CLASSES        # 25
YT_ROWS = BBOX_ATTRS + 1            # 26: row 25 carries (2 - loss_scale)
ANCHORS = np.array(
    [[10, 13], [16, 30], [33, 23],
     [30, 61], [62, 45], [59, 119],
     [116, 90], [156, 198], [373, 326]], dtype=np.float32)
ANCHORS_MASK = [[6, 7, 8], [3, 4, 5], [0, 1, 2]]
INPUT_SHAPE = (256, 256)            # (in_h, in_w)
LOC_RATIO = 1.0
CLS_RATIO = 1.0
CONF_RATIO = 1.0
BALANCE = [0.4, 1.0, 4.0]
EPS = 1e-07
LOG_EPS = float(math.log(EPS))
LOG_1MEPS = float(math.log1p(-EPS))


def _round_up(x, m):
    return ((x + m - 1) // m) * m


# ------------------------------ Pallas kernel ------------------------------
def _clipped_bce_from_logits(x, y):
    """BCE(clip(sigmoid(x), eps, 1-eps), y) computed directly from logits.

    log(clip(sigmoid(x)))     = clip(-softplus(-x), log(eps), log(1-eps))
    log(clip(1 - sigmoid(x))) = clip(-softplus( x), log(eps), log(1-eps))
    softplus(+-x) = max(+-x, 0) + log(1 + exp(-|x|))
    -> 2 EUP ops (exp, log) per element instead of 4 (sigmoid + two logs),
    while preserving the reference's eps-clipping semantics.
    """
    lse = jnp.log(1.0 + jnp.exp(-jnp.abs(x)))
    log_p = jnp.clip(-(lse + jnp.maximum(-x, 0.0)), LOG_EPS, LOG_1MEPS)
    log_1mp = jnp.clip(-(lse + jnp.maximum(x, 0.0)), LOG_EPS, LOG_1MEPS)
    return -y * log_p - (1.0 - y) * log_1mp


def _yolo_loss_kernel(pred_ref, ytrue_ref, out_ref, *, true_m):
    """Accumulates masked partial sums of the YOLOv3 loss terms.

    pred_ref  : (25, TM) f32 block — attributes on sublanes, positions on lanes
    ytrue_ref : (26, TM) f32 block — rows 0..24 targets, row 25 = 2 - loss_scale
    out_ref   : (8,) f32 SMEM, resident across the grid (accumulator):
        [sum_xy_bce, sum_wh_mse, sum_conf_bce, sum_cls_bce, pos_num, 0, 0, 0]
    """
    i = pl.program_id(0)
    bm = pred_ref.shape[1]

    @pl.when(i == 0)
    def _init():
        for k in range(8):
            out_ref[k] = 0.0

    pred = pred_ref[...]
    yt = ytrue_ref[...]

    # Lane-validity mask for the zero-padded tail of M (keeps the conf mean
    # divisor exact: padded positions must not contribute BCE(sigmoid(0),0)).
    lane = jax.lax.broadcasted_iota(jnp.int32, (1, bm), 1)
    valid = ((i * bm + lane) < true_m).astype(jnp.float32)          # (1, TM)

    obj = (yt[4:5, :] == 1.0).astype(jnp.float32)                   # (1, TM)
    obj_ls = obj * yt[BBOX_ATTRS:YT_ROWS, :]                        # obj * (2 - loss_scale)

    # x, y rows (0:2): clipped BCE, obj-masked, loss-scaled.
    bce_xy = _clipped_bce_from_logits(pred[0:2, :], yt[0:2, :])
    sum_xy = jnp.sum(bce_xy * obj_ls)

    # w, h rows (2:4): MSE, obj-masked, loss-scaled (no transcendentals).
    d_wh = pred[2:4, :] - yt[2:4, :]
    sum_wh = jnp.sum(d_wh * d_wh * obj_ls)

    # conf row (4): clipped BCE over all valid positions.
    bce_conf = _clipped_bce_from_logits(pred[4:5, :], yt[4:5, :])
    sum_conf = jnp.sum(bce_conf * valid)

    # class rows (5:25): clipped BCE, obj-masked.
    bce_cls = _clipped_bce_from_logits(pred[5:BBOX_ATTRS, :], yt[5:BBOX_ATTRS, :])
    sum_cls = jnp.sum(bce_cls * obj)

    pos = jnp.sum(obj)   # padded lanes have yt[4] == 0, so they never count

    out_ref[0] += sum_xy
    out_ref[1] += sum_wh
    out_ref[2] += sum_conf
    out_ref[3] += sum_cls
    out_ref[4] += pos


def run_pallas_loss_sums(pred_km, ytrue_km, true_m, block_m):
    m_pad = pred_km.shape[1]
    grid = (m_pad // block_m,)
    kernel = functools.partial(_yolo_loss_kernel, true_m=true_m)
    return pl.pallas_call(
        kernel,
        out_shape=jax.ShapeDtypeStruct((8,), jnp.float32),
        grid_spec=pltpu.PrefetchScalarGridSpec(
            num_scalar_prefetch=0,
            grid=grid,
            in_specs=[
                pl.BlockSpec((BBOX_ATTRS, block_m), lambda i: (0, i)),
                pl.BlockSpec((YT_ROWS, block_m), lambda i: (0, i)),
            ],
            out_specs=pl.BlockSpec(memory_space=pltpu.MemorySpace.SMEM),
        ),
        compiler_params=pltpu.CompilerParams(
            dimension_semantics=("arbitrary",),      # output is an accumulator
            vmem_limit_bytes=32 * 1024 * 1024,       # safe on v5e's 16 MiB default
        ),
    )(pred_km, ytrue_km)


# -------------------------- numpy glue: get_target --------------------------
def _iou_np(box_a, box_b):
    b1_x1, b1_x2 = box_a[:, 0] - box_a[:, 2] / 2, box_a[:, 0] + box_a[:, 2] / 2
    b1_y1, b1_y2 = box_a[:, 1] - box_a[:, 3] / 2, box_a[:, 1] + box_a[:, 3] / 2
    b2_x1, b2_x2 = box_b[:, 0] - box_b[:, 2] / 2, box_b[:, 0] + box_b[:, 2] / 2
    b2_y1, b2_y2 = box_b[:, 1] - box_b[:, 3] / 2, box_b[:, 1] + box_b[:, 3] / 2
    a = np.stack([b1_x1, b1_y1, b1_x2, b1_y2], axis=1)
    b = np.stack([b2_x1, b2_y1, b2_x2, b2_y2], axis=1)
    max_xy = np.minimum(a[:, None, 2:], b[None, :, 2:])
    min_xy = np.maximum(a[:, None, :2], b[None, :, :2])
    inter = np.clip(max_xy - min_xy, 0, None)
    inter = inter[:, :, 0] * inter[:, :, 1]
    area_a = ((a[:, 2] - a[:, 0]) * (a[:, 3] - a[:, 1]))[:, None]
    area_b = ((b[:, 2] - b[:, 0]) * (b[:, 3] - b[:, 1]))[None, :]
    union = area_a + area_b - inter
    return inter / union


def get_target_np(layer_i, targets, scaled_anchors, out_h, out_w):
    batch = len(targets)
    y_true = np.zeros((batch, NUM_BOX, out_h, out_w, BBOX_ATTRS), np.float32)
    obj_mask = np.zeros((batch, NUM_BOX, out_h, out_w), np.float32)
    loss_scale = np.zeros((batch, NUM_BOX, out_h, out_w), np.float32)
    for b in range(batch):
        t = np.asarray(targets[b], np.float32)
        if t.shape[0] == 0:
            continue
        bt = np.zeros_like(t)
        bt[:, [0, 2]] = t[:, [0, 2]] * out_w
        bt[:, [1, 3]] = t[:, [1, 3]] * out_h
        bt[:, 4] = t[:, 4]
        gt_box = np.concatenate([np.zeros((bt.shape[0], 2), np.float32),
                                 bt[:, 2:4]], axis=1)
        gt_anchor = np.concatenate([np.zeros((len(ANCHORS), 2), np.float32),
                                    scaled_anchors.astype(np.float32)], axis=1)
        best = np.argmax(_iou_np(gt_box, gt_anchor), axis=-1)
        for ti, aid in enumerate(best):
            if aid not in ANCHORS_MASK[layer_i]:
                continue
            c = int(bt[ti, 4])
            apos = ANCHORS_MASK[layer_i].index(aid)
            gx = int(math.floor(bt[ti, 0]))
            gy = int(math.floor(bt[ti, 1]))
            y_true[b, apos, gy, gx, 0] = bt[ti, 0] - gx
            y_true[b, apos, gy, gx, 1] = bt[ti, 1] - gy
            y_true[b, apos, gy, gx, 2] = math.log(bt[ti, 2] / scaled_anchors[aid][0])
            y_true[b, apos, gy, gx, 3] = math.log(bt[ti, 3] / scaled_anchors[aid][1])
            y_true[b, apos, gy, gx, 5 + c] = 1.0
            y_true[b, apos, gy, gx, 4] = 1.0
            obj_mask[b, apos, gy, gx] = 1.0
            loss_scale[b, apos, gy, gx] = bt[ti, 2] * bt[ti, 3] / out_h / out_w
    return y_true, obj_mask, loss_scale


# ------------------------------ forward wrapper ------------------------------
def yolov3_loss(layer_i, pred_nchw, targets, *, block_m=8192):
    """Returns losses = [total_loss, conf_loss, loc_loss, cls_loss] (f32[4])."""
    B = pred_nchw.shape[0]
    out_h, out_w = pred_nchw.shape[-2], pred_nchw.shape[-1]
    stride_y = INPUT_SHAPE[0] / out_h
    stride_x = INPUT_SHAPE[1] / out_w
    scaled_anchors = ANCHORS / np.array([stride_x, stride_y], np.float32)

    # TODO(synk): in a real training loop precompute get_target_np / the target
    # slab asynchronously (or jit a vectorized version) so the Pallas call is
    # not gated on per-step host numpy + fresh H2D transfers.
    y_true, _obj_mask, loss_scale = get_target_np(
        layer_i, targets, scaled_anchors, out_h, out_w)

    M = B * NUM_BOX * out_h * out_w
    tm = min(block_m, _round_up(M, 128))
    m_pad = _round_up(M, tm)

    # pred: NCHW -> (B, nb, 25, H, W) -> (25, B, nb, H, W) -> (25, M) lane-dense
    pred = pred_nchw.reshape(B, NUM_BOX, BBOX_ATTRS, out_h, out_w)
    pred_km = jnp.transpose(pred, (2, 0, 1, 3, 4)).reshape(BBOX_ATTRS, M)
    pred_km = pred_km.astype(jnp.float32)
    if m_pad > M:
        pred_km = jnp.pad(pred_km, ((0, 0), (0, m_pad - M)))

    # targets: (26, m_pad) slab, row 25 = (2 - loss_scale); pad lanes stay zero.
    yt_km = np.zeros((YT_ROWS, m_pad), np.float32)
    yt_km[:BBOX_ATTRS, :M] = np.transpose(
        y_true, (4, 0, 1, 2, 3)).reshape(BBOX_ATTRS, M)
    yt_km[BBOX_ATTRS, :M] = (2.0 - loss_scale).reshape(M)
    yt_km = jnp.asarray(yt_km)

    sums = run_pallas_loss_sums(pred_km, yt_km, M, tm)
    sum_xy, sum_wh = sums[0], sums[1]
    sum_conf, sum_cls, pos_num = sums[2], sums[3], sums[4]

    safe_pos = jnp.maximum(pos_num, 1.0)
    # loss_x + loss_y + loss_w + loss_h all share the same divisor pos_num.
    loc_loss = (sum_xy + sum_wh) / safe_pos * 0.1
    cls_loss = sum_cls / (safe_pos * NUM_CLASSES)
    conf_loss = (sum_conf / float(M)) * BALANCE[layer_i]

    has_pos = pos_num > 0
    loc_loss = jnp.where(has_pos, loc_loss, 0.0)
    cls_loss = jnp.where(has_pos, cls_loss, 0.0)
    total_loss = (loc_loss * LOC_RATIO + cls_loss * CLS_RATIO
                  + conf_loss * CONF_RATIO)
    return jnp.stack([total_loss, conf_loss, loc_loss, cls_loss])


# ------------------------------------ main ------------------------------------
if __name__ == "__main__":
    key = jax.random.PRNGKey(0)
    k1, k2, k3 = jax.random.split(key, 3)

    B, H, W = 2, 8, 8
    pred = jax.random.normal(k1, (B, NUM_BOX * BBOX_ATTRS, H, W), jnp.float32)

    # synthetic GT: per image (T, 5) = [cx, cy, w, h, cls], normalized coords
    T = 3
    boxes = np.asarray(jax.random.uniform(k2, (B, T, 4),
                                          minval=0.05, maxval=0.9))
    cls = np.asarray(jax.random.randint(k3, (B, T, 1), 0, NUM_CLASSES),
                     dtype=np.float32)
    targets = [np.concatenate([boxes[b], cls[b]], axis=1).astype(np.float32)
               for b in range(B)]

    # block_m=128 forces a multi-block grid (M = 384 -> 3 blocks) so the
    # accumulating grid path is exercised; default block_m=8192 for real sizes.
    losses = yolov3_loss(0, pred, targets, block_m=128)
    losses = jax.block_until_ready(losses)
    assert losses.shape == (4,) and jnp.all(jnp.isfinite(losses))
    print("KERNEL_OK")
</pallas_src>

<mosaic_0001>
module attributes {stable_mosaic.version = 11 : i64} {
  func.func @_yolo_loss_kernel(%arg0: i32, %arg1: memref<25x128xf32, #tpu.memory_space<vmem>>, %arg2: memref<26x128xf32, #tpu.memory_space<vmem>>, %arg3: memref<8xf32, #tpu.memory_space<smem>>) attributes {dimension_semantics = [#tpu.dimension_semantics<arbitrary>], iteration_bounds = array<i64: 3>, scalar_prefetch = 0 : i64, scratch_operands = 0 : i64, tpu.core_type = #tpu.core_type<tc>, window_params = [{transform_indices = @transform_0, window_bounds = array<i64: 25, 128>}, {transform_indices = @transform_1, window_bounds = array<i64: 26, 128>}, {transform_indices = @transform_2, window_bounds = array<i64: 8>}]} {
    %c0_i32 = arith.constant 0 : i32
    %0 = arith.cmpi eq, %arg0, %c0_i32 : i32
    %1 = arith.extui %0 : i1 to i32
    %c0_i32_0 = arith.constant 0 : i32
    %2 = arith.cmpi ne, %1, %c0_i32_0 : i32
    scf.if %2 {
      %cst_54 = arith.constant 0.000000e+00 : f32
      %c0_55 = arith.constant 0 : index
      %174 = memref.load %arg3[%c0_55] : memref<8xf32, #tpu.memory_space<smem>>
      memref.store %cst_54, %arg3[%c0_55] : memref<8xf32, #tpu.memory_space<smem>>
      %cst_56 = arith.constant 0.000000e+00 : f32
      %c1_57 = arith.constant 1 : index
      %175 = memref.load %arg3[%c1_57] : memref<8xf32, #tpu.memory_space<smem>>
      memref.store %cst_56, %arg3[%c1_57] : memref<8xf32, #tpu.memory_space<smem>>
      %cst_58 = arith.constant 0.000000e+00 : f32
      %c2_59 = arith.constant 2 : index
      %176 = memref.load %arg3[%c2_59] : memref<8xf32, #tpu.memory_space<smem>>
      memref.store %cst_58, %arg3[%c2_59] : memref<8xf32, #tpu.memory_space<smem>>
      %cst_60 = arith.constant 0.000000e+00 : f32
      %c3_61 = arith.constant 3 : index
      %177 = memref.load %arg3[%c3_61] : memref<8xf32, #tpu.memory_space<smem>>
      memref.store %cst_60, %arg3[%c3_61] : memref<8xf32, #tpu.memory_space<smem>>
      %cst_62 = arith.constant 0.000000e+00 : f32
      %c4_63 = arith.constant 4 : index
      %178 = memref.load %arg3[%c4_63] : memref<8xf32, #tpu.memory_space<smem>>
      memref.store %cst_62, %arg3[%c4_63] : memref<8xf32, #tpu.memory_space<smem>>
      %cst_64 = arith.constant 0.000000e+00 : f32
      %c5 = arith.constant 5 : index
      %179 = memref.load %arg3[%c5] : memref<8xf32, #tpu.memory_space<smem>>
      memref.store %cst_64, %arg3[%c5] : memref<8xf32, #tpu.memory_space<smem>>
      %cst_65 = arith.constant 0.000000e+00 : f32
      %c6 = arith.constant 6 : index
      %180 = memref.load %arg3[%c6] : memref<8xf32, #tpu.memory_space<smem>>
      memref.store %cst_65, %arg3[%c6] : memref<8xf32, #tpu.memory_space<smem>>
      %cst_66 = arith.constant 0.000000e+00 : f32
      %c7 = arith.constant 7 : index
      %181 = memref.load %arg3[%c7] : memref<8xf32, #tpu.memory_space<smem>>
      memref.store %cst_66, %arg3[%c7] : memref<8xf32, #tpu.memory_space<smem>>
    } else {
    }
    %c0 = arith.constant 0 : index
    %c0_1 = arith.constant 0 : index
    %3 = vector.load %arg1[%c0, %c0_1] : memref<25x128xf32, #tpu.memory_space<vmem>>, vector<25x128xf32>
    %c0_2 = arith.constant 0 : index
    %c0_3 = arith.constant 0 : index
    %4 = vector.load %arg2[%c0_2, %c0_3] : memref<26x128xf32, #tpu.memory_space<vmem>>, vector<26x128xf32>
    %5 = tpu.iota {dimensions = array<i32: 1>} : vector<1x128xi32>
    %c128_i32 = arith.constant 128 : i32
    %6 = arith.muli %arg0, %c128_i32 : i32
    %7 = vector.broadcast %6 : i32 to vector<1x128xi32>
    %8 = arith.addi %7, %5 : vector<1x128xi32>
    %c384_i32 = arith.constant 384 : i32
    %9 = vector.broadcast %c384_i32 : i32 to vector<1x128xi32>
    %10 = arith.cmpi slt, %8, %9 : vector<1x128xi32>
    %11 = arith.extui %10 : vector<1x128xi1> to vector<1x128xi32>
    %12 = arith.sitofp %11 : vector<1x128xi32> to vector<1x128xf32>
    %13 = vector.extract_strided_slice %4 {offsets = [4, 0], sizes = [1, 128], strides = [1, 1]} : vector<26x128xf32> to vector<1x128xf32>
    %cst = arith.constant 1.000000e+00 : f32
    %14 = vector.broadcast %cst : f32 to vector<1x128xf32>
    %15 = arith.cmpf oeq, %13, %14 : vector<1x128xf32>
    %16 = arith.extui %15 : vector<1x128xi1> to vector<1x128xi32>
    %17 = arith.sitofp %16 : vector<1x128xi32> to vector<1x128xf32>
    %18 = vector.extract_strided_slice %4 {offsets = [25, 0], sizes = [1, 128], strides = [1, 1]} : vector<26x128xf32> to vector<1x128xf32>
    %19 = arith.mulf %17, %18 : vector<1x128xf32>
    %20 = vector.extract_strided_slice %3 {offsets = [0, 0], sizes = [2, 128], strides = [1, 1]} : vector<25x128xf32> to vector<2x128xf32>
    %21 = vector.extract_strided_slice %4 {offsets = [0, 0], sizes = [2, 128], strides = [1, 1]} : vector<26x128xf32> to vector<2x128xf32>
    %22 = math.absf %20 : vector<2x128xf32>
    %cst_4 = arith.constant 0.000000e+00 : f32
    %23 = vector.broadcast %cst_4 : f32 to vector<2x128xf32>
    %24 = arith.subf %23, %22 : vector<2x128xf32>
    %25 = math.exp %24 : vector<2x128xf32>
    %cst_5 = arith.constant 1.000000e+00 : f32
    %26 = vector.broadcast %cst_5 : f32 to vector<2x128xf32>
    %27 = arith.addf %26, %25 : vector<2x128xf32>
    %28 = math.log %27 : vector<2x128xf32>
    %cst_6 = arith.constant 0.000000e+00 : f32
    %29 = vector.broadcast %cst_6 : f32 to vector<2x128xf32>
    %30 = arith.subf %29, %20 : vector<2x128xf32>
    %cst_7 = arith.constant 0.000000e+00 : f32
    %31 = vector.broadcast %cst_7 : f32 to vector<2x128xf32>
    %32 = arith.maximumf %30, %31 : vector<2x128xf32>
    %33 = arith.addf %28, %32 : vector<2x128xf32>
    %cst_8 = arith.constant 0.000000e+00 : f32
    %34 = vector.broadcast %cst_8 : f32 to vector<2x128xf32>
    %35 = arith.subf %34, %33 : vector<2x128xf32>
    %cst_9 = arith.constant -16.1180954 : f32
    %cst_10 = arith.constant -1.00000008E-7 : f32
    %36 = vector.broadcast %cst_9 : f32 to vector<2x128xf32>
    %37 = arith.maximumf %36, %35 : vector<2x128xf32>
    %38 = vector.broadcast %cst_10 : f32 to vector<2x128xf32>
    %39 = arith.minimumf %38, %37 : vector<2x128xf32>
    %cst_11 = arith.constant 0.000000e+00 : f32
    %40 = vector.broadcast %cst_11 : f32 to vector<2x128xf32>
    %41 = arith.maximumf %20, %40 : vector<2x128xf32>
    %42 = arith.addf %28, %41 : vector<2x128xf32>
    %cst_12 = arith.constant 0.000000e+00 : f32
    %43 = vector.broadcast %cst_12 : f32 to vector<2x128xf32>
    %44 = arith.subf %43, %42 : vector<2x128xf32>
    %cst_13 = arith.constant -16.1180954 : f32
    %cst_14 = arith.constant -1.00000008E-7 : f32
    %45 = vector.broadcast %cst_13 : f32 to vector<2x128xf32>
    %46 = arith.maximumf %45, %44 : vector<2x128xf32>
    %47 = vector.broadcast %cst_14 : f32 to vector<2x128xf32>
    %48 = arith.minimumf %47, %46 : vector<2x128xf32>
    %cst_15 = arith.constant 0.000000e+00 : f32
    %49 = vector.broadcast %cst_15 : f32 to vector<2x128xf32>
    %50 = arith.subf %49, %21 : vector<2x128xf32>
    %51 = arith.mulf %50, %39 : vector<2x128xf32>
    %cst_16 = arith.constant 1.000000e+00 : f32
    %52 = vector.broadcast %cst_16 : f32 to vector<2x128xf32>
    %53 = arith.subf %52, %21 : vector<2x128xf32>
    %54 = arith.mulf %53, %48 : vector<2x128xf32>
    %55 = arith.subf %51, %54 : vector<2x128xf32>
    %56 = vector.broadcast %19 : vector<1x128xf32> to vector<2x128xf32>
    %57 = arith.mulf %55, %56 : vector<2x128xf32>
    %58 = vector.shape_cast %57 : vector<2x128xf32> to vector<1x2x128xf32>
    %cst_17 = arith.constant dense<0.000000e+00> : vector<1xf32>
    %59 = vector.multi_reduction <add>, %58, %cst_17 [1, 2] : vector<1x2x128xf32> to vector<1xf32>
    %60 = vector.shape_cast %59 : vector<1xf32> to vector<1x1x1xf32>
    %61 = vector.extract %60[0, 0, 0] : f32 from vector<1x1x1xf32>
    %62 = vector.extract_strided_slice %3 {offsets = [2, 0], sizes = [2, 128], strides = [1, 1]} : vector<25x128xf32> to vector<2x128xf32>
    %63 = vector.extract_strided_slice %4 {offsets = [2, 0], sizes = [2, 128], strides = [1, 1]} : vector<26x128xf32> to vector<2x128xf32>
    %64 = arith.subf %62, %63 : vector<2x128xf32>
    %65 = arith.mulf %64, %64 : vector<2x128xf32>
    %66 = vector.broadcast %19 : vector<1x128xf32> to vector<2x128xf32>
    %67 = arith.mulf %65, %66 : vector<2x128xf32>
    %68 = vector.shape_cast %67 : vector<2x128xf32> to vector<1x2x128xf32>
    %cst_18 = arith.constant dense<0.000000e+00> : vector<1xf32>
    %69 = vector.multi_reduction <add>, %68, %cst_18 [1, 2] : vector<1x2x128xf32> to vector<1xf32>
    %70 = vector.shape_cast %69 : vector<1xf32> to vector<1x1x1xf32>
    %71 = vector.extract %70[0, 0, 0] : f32 from vector<1x1x1xf32>
    %72 = vector.extract_strided_slice %3 {offsets = [4, 0], sizes = [1, 128], strides = [1, 1]} : vector<25x128xf32> to vector<1x128xf32>
    %73 = vector.extract_strided_slice %4 {offsets = [4, 0], sizes = [1, 128], strides = [1, 1]} : vector<26x128xf32> to vector<1x128xf32>
    %74 = math.absf %72 : vector<1x128xf32>
    %cst_19 = arith.constant 0.000000e+00 : f32
    %75 = vector.broadcast %cst_19 : f32 to vector<1x128xf32>
    %76 = arith.subf %75, %74 : vector<1x128xf32>
    %77 = math.exp %76 : vector<1x128xf32>
    %cst_20 = arith.constant 1.000000e+00 : f32
    %78 = vector.broadcast %cst_20 : f32 to vector<1x128xf32>
    %79 = arith.addf %78, %77 : vector<1x128xf32>
    %80 = math.log %79 : vector<1x128xf32>
    %cst_21 = arith.constant 0.000000e+00 : f32
    %81 = vector.broadcast %cst_21 : f32 to vector<1x128xf32>
    %82 = arith.subf %81, %72 : vector<1x128xf32>
    %cst_22 = arith.constant 0.000000e+00 : f32
    %83 = vector.broadcast %cst_22 : f32 to vector<1x128xf32>
    %84 = arith.maximumf %82, %83 : vector<1x128xf32>
    %85 = arith.addf %80, %84 : vector<1x128xf32>
    %cst_23 = arith.constant 0.000000e+00 : f32
    %86 = vector.broadcast %cst_23 : f32 to vector<1x128xf32>
    %87 = arith.subf %86, %85 : vector<1x128xf32>
    %cst_24 = arith.constant -16.1180954 : f32
    %cst_25 = arith.constant -1.00000008E-7 : f32
    %88 = vector.broadcast %cst_24 : f32 to vector<1x128xf32>
    %89 = arith.maximumf %88, %87 : vector<1x128xf32>
    %90 = vector.broadcast %cst_25 : f32 to vector<1x128xf32>
    %91 = arith.minimumf %90, %89 : vector<1x128xf32>
    %cst_26 = arith.constant 0.000000e+00 : f32
    %92 = vector.broadcast %cst_26 : f32 to vector<1x128xf32>
    %93 = arith.maximumf %72, %92 : vector<1x128xf32>
    %94 = arith.addf %80, %93 : vector<1x128xf32>
    %cst_27 = arith.constant 0.000000e+00 : f32
    %95 = vector.broadcast %cst_27 : f32 to vector<1x128xf32>
    %96 = arith.subf %95, %94 : vector<1x128xf32>
    %cst_28 = arith.constant -16.1180954 : f32
    %cst_29 = arith.constant -1.00000008E-7 : f32
    %97 = vector.broadcast %cst_28 : f32 to vector<1x128xf32>
    %98 = arith.maximumf %97, %96 : vector<1x128xf32>
    %99 = vector.broadcast %cst_29 : f32 to vector<1x128xf32>
    %100 = arith.minimumf %99, %98 : vector<1x128xf32>
    %cst_30 = arith.constant 0.000000e+00 : f32
    %101 = vector.broadcast %cst_30 : f32 to vector<1x128xf32>
    %102 = arith.subf %101, %73 : vector<1x128xf32>
    %103 = arith.mulf %102, %91 : vector<1x128xf32>
    %cst_31 = arith.constant 1.000000e+00 : f32
    %104 = vector.broadcast %cst_31 : f32 to vector<1x128xf32>
    %105 = arith.subf %104, %73 : vector<1x128xf32>
    %106 = arith.mulf %105, %100 : vector<1x128xf32>
    %107 = arith.subf %103, %106 : vector<1x128xf32>
    %108 = arith.mulf %107, %12 : vector<1x128xf32>
    %109 = vector.shape_cast %108 : vector<1x128xf32> to vector<1x1x128xf32>
    %cst_32 = arith.constant dense<0.000000e+00> : vector<1xf32>
    %110 = vector.multi_reduction <add>, %109, %cst_32 [1, 2] : vector<1x1x128xf32> to vector<1xf32>
    %111 = vector.shape_cast %110 : vector<1xf32> to vector<1x1x1xf32>
    %112 = vector.extract %111[0, 0, 0] : f32 from vector<1x1x1xf32>
    %113 = vector.extract_strided_slice %3 {offsets = [5, 0], sizes = [20, 128], strides = [1, 1]} : vector<25x128xf32> to vector<20x128xf32>
    %114 = vector.extract_strided_slice %4 {offsets = [5, 0], sizes = [20, 128], strides = [1, 1]} : vector<26x128xf32> to vector<20x128xf32>
    %115 = math.absf %113 : vector<20x128xf32>
    %cst_33 = arith.constant 0.000000e+00 : f32
    %116 = vector.broadcast %cst_33 : f32 to vector<20x128xf32>
    %117 = arith.subf %116, %115 : vector<20x128xf32>
    %118 = math.exp %117 : vector<20x128xf32>
    %cst_34 = arith.constant 1.000000e+00 : f32
    %119 = vector.broadcast %cst_34 : f32 to vector<20x128xf32>
    %120 = arith.addf %119, %118 : vector<20x128xf32>
    %121 = math.log %120 : vector<20x128xf32>
    %cst_35 = arith.constant 0.000000e+00 : f32
    %122 = vector.broadcast %cst_35 : f32 to vector<20x128xf32>
    %123 = arith.subf %122, %113 : vector<20x128xf32>
    %cst_36 = arith.constant 0.000000e+00 : f32
    %124 = vector.broadcast %cst_36 : f32 to vector<20x128xf32>
    %125 = arith.maximumf %123, %124 : vector<20x128xf32>
    %126 = arith.addf %121, %125 : vector<20x128xf32>
    %cst_37 = arith.constant 0.000000e+00 : f32
    %127 = vector.broadcast %cst_37 : f32 to vector<20x128xf32>
    %128 = arith.subf %127, %126 : vector<20x128xf32>
    %cst_38 = arith.constant -16.1180954 : f32
    %cst_39 = arith.constant -1.00000008E-7 : f32
    %129 = vector.broadcast %cst_38 : f32 to vector<20x128xf32>
    %130 = arith.maximumf %129, %128 : vector<20x128xf32>
    %131 = vector.broadcast %cst_39 : f32 to vector<20x128xf32>
    %132 = arith.minimumf %131, %130 : vector<20x128xf32>
    %cst_40 = arith.constant 0.000000e+00 : f32
    %133 = vector.broadcast %cst_40 : f32 to vector<20x128xf32>
    %134 = arith.maximumf %113, %133 : vector<20x128xf32>
    %135 = arith.addf %121, %134 : vector<20x128xf32>
    %cst_41 = arith.constant 0.000000e+00 : f32
    %136 = vector.broadcast %cst_41 : f32 to vector<20x128xf32>
    %137 = arith.subf %136, %135 : vector<20x128xf32>
    %cst_42 = arith.constant -16.1180954 : f32
    %cst_43 = arith.constant -1.00000008E-7 : f32
    %138 = vector.broadcast %cst_42 : f32 to vector<20x128xf32>
    %139 = arith.maximumf %138, %137 : vector<20x128xf32>
    %140 = vector.broadcast %cst_43 : f32 to vector<20x128xf32>
    %141 = arith.minimumf %140, %139 : vector<20x128xf32>
    %cst_44 = arith.constant 0.000000e+00 : f32
    %142 = vector.broadcast %cst_44 : f32 to vector<20x128xf32>
    %143 = arith.subf %142, %114 : vector<20x128xf32>
    %144 = arith.mulf %143, %132 : vector<20x128xf32>
    %cst_45 = arith.constant 1.000000e+00 : f32
    %145 = vector.broadcast %cst_45 : f32 to vector<20x128xf32>
    %146 = arith.subf %145, %114 : vector<20x128xf32>
    %147 = arith.mulf %146, %141 : vector<20x128xf32>
    %148 = arith.subf %144, %147 : vector<20x128xf32>
    %149 = vector.broadcast %17 : vector<1x128xf32> to vector<20x128xf32>
    %150 = arith.mulf %148, %149 : vector<20x128xf32>
    %151 = vector.shape_cast %150 : vector<20x128xf32> to vector<1x20x128xf32>
    %cst_46 = arith.constant dense<0.000000e+00> : vector<1xf32>
    %152 = vector.multi_reduction <add>, %151, %cst_46 [1, 2] : vector<1x20x128xf32> to vector<1xf32>
    %153 = vector.shape_cast %152 : vector<1xf32> to vector<1x1x1xf32>
    %154 = vector.extract %153[0, 0, 0] : f32 from vector<1x1x1xf32>
    %155 = vector.shape_cast %17 : vector<1x128xf32> to vector<1x1x128xf32>
    %cst_47 = arith.constant dense<0.000000e+00> : vector<1xf32>
    %156 = vector.multi_reduction <add>, %155, %cst_47 [1, 2] : vector<1x1x128xf32> to vector<1xf32>
    %157 = vector.shape_cast %156 : vector<1xf32> to vector<1x1x1xf32>
    %158 = vector.extract %157[0, 0, 0] : f32 from vector<1x1x1xf32>
    %c0_48 = arith.constant 0 : index
    %159 = memref.load %arg3[%c0_48] : memref<8xf32, #tpu.memory_space<smem>>
    %160 = arith.addf %159, %61 : f32
    %c0_49 = arith.constant 0 : index
    %161 = memref.load %arg3[%c0_49] : memref<8xf32, #tpu.memory_space<smem>>
    memref.store %160, %arg3[%c0_49] : memref<8xf32, #tpu.memory_space<smem>>
    %c1 = arith.constant 1 : index
    %162 = memref.load %arg3[%c1] : memref<8xf32, #tpu.memory_space<smem>>
    %163 = arith.addf %162, %71 : f32
    %c1_50 = arith.constant 1 : index
    %164 = memref.load %arg3[%c1_50] : memref<8xf32, #tpu.memory_space<smem>>
    memref.store %163, %arg3[%c1_50] : memref<8xf32, #tpu.memory_space<smem>>
    %c2 = arith.constant 2 : index
    %165 = memref.load %arg3[%c2] : memref<8xf32, #tpu.memory_space<smem>>
    %166 = arith.addf %165, %112 : f32
    %c2_51 = arith.constant 2 : index
    %167 = memref.load %arg3[%c2_51] : memref<8xf32, #tpu.memory_space<smem>>
    memref.store %166, %arg3[%c2_51] : memref<8xf32, #tpu.memory_space<smem>>
    %c3 = arith.constant 3 : index
    %168 = memref.load %arg3[%c3] : memref<8xf32, #tpu.memory_space<smem>>
    %169 = arith.addf %168, %154 : f32
    %c3_52 = arith.constant 3 : index
    %170 = memref.load %arg3[%c3_52] : memref<8xf32, #tpu.memory_space<smem>>
    memref.store %169, %arg3[%c3_52] : memref<8xf32, #tpu.memory_space<smem>>
    %c4 = arith.constant 4 : index
    %171 = memref.load %arg3[%c4] : memref<8xf32, #tpu.memory_space<smem>>
    %172 = arith.addf %171, %158 : f32
    %c4_53 = arith.constant 4 : index
    %173 = memref.load %arg3[%c4_53] : memref<8xf32, #tpu.memory_space<smem>>
    memref.store %172, %arg3[%c4_53] : memref<8xf32, #tpu.memory_space<smem>>
    return
  }
  func.func @transform_0(%arg0: i32) -> (i32, i32) {
    %c0_i32 = arith.constant 0 : i32
    %c0_i32_0 = arith.constant 0 : i32
    return %c0_i32, %arg0 : i32, i32
  }
  func.func @transform_1(%arg0: i32) -> (i32, i32) {
    %c0_i32 = arith.constant 0 : i32
    %c0_i32_0 = arith.constant 0 : i32
    return %c0_i32, %arg0 : i32, i32
  }
  func.func @transform_2(%arg0: i32) -> i32 {
    %c0_i32 = arith.constant 0 : i32
    %c0_i32_0 = arith.constant 0 : i32
    return %c0_i32 : i32
  }
}

</mosaic_0001>

<bundles_post_ra>
// kernel: tpu_custom_call.1
= control target key start
LH: loop header
LB: loop body
LE: loop exit
PB: predicated region body
PF: predicated region fallthrough
CT: control target
= control target key end

     0   :  { %7 = vsyncpa [#allocation3], 0  ;;  %s1014_s0 = inlined_call_operand.hbm [shape: f32[25,384], index: 0, kind: input, shape index: {}]   ;;  %s1015_s1 = inlined_call_operand.hbm [shape: f32[26,384], index: 1, kind: input, shape index: {}]   ;;  %s1016_s2 = inlined_call_operand.hbm [shape: f32[8], index: 2, kind: output, shape index: {}]  }
   0x1   :  { %9 = vsyncpa [#allocation3 + $0x1], 0 }
   0x2   :  { %10 = vsyncpa [#allocation6], 0 }
   0x3   :  { %12 = vsyncpa [#allocation6 + $0x1], 0 }
   0x4   :  { %13 = vsyncpa [#allocation4], 0  ;;  %s765_s9 = smov 0   ;;  %s767_s10 = smov 0  }
   0x5   :  { %s769_s11 = smov 0   ;;  %s771_s12 = smov 0  }
   0x6 LB: > { %s784_s13 = sadd.s32 4294967295, %s740_s12   ;;  %s787_s14 = sadd.s32 1, %s740_s12   ;;  %s740_s12 = sphi %s771_s12, %s1034_s12   ;;  %s736_s11 = sphi %s769_s11, %s1033_s11   ;;  %s732_s10 = sphi %s767_s10, %s1032_s10   ;;  %s728_s9 = sphi %s765_s9, %s1031_s9  }
   0x7   : > { %s23_s15 = ssub.s32 %s740_s12, %s787_s14  ;;  %s26_s16 = sadd.s32 1, %s736_s11 }
   0x8   : > { %p24_p0 = scmp.eq.s32.totalorder %s23_s15, 0  ;;  %p33_p1 = scmp.ne.s32.totalorder %s736_s11, %s732_s10 }
   0x9   : > { %p34_p2 = scmp.eq.s32.totalorder %s740_s12, 0  ;;  %p39_p3 = scmp.ne.s32.totalorder %s732_s10, %s728_s9 }
   0xa   : > { %s797_s17 = scalar_select %p24_p0, %s736_s11, %s26_s16  }
   0xb   : > { %p35_p4 = por %p34_p2, %p33_p1  ;;  %p1017_p5 = scmp.eq.s32.totalorder %s784_s13, 0 }
   0xc   : > { %p574_p6 = scmp.lt.s32.totalorder %s740_s12, 3  ;;  %s808_s19 = sand.u32 1, %s736_s11  }
   0xd   : > { %p803_p7 = por %p1017_p5, %p39_p3  ;;  %s521_s20 = sshll.u32 %s808_s19, 5 }
   0xe   : > { %s522_s21 = sshll.u32 %s740_s12, 7  ;;  %s114_s25 = scalar_lea.vmem [#allocation2], %s521_s20 }
   0xf   : > { %s1019_s18 = scalar_select %p803_p7, 1, 0 }
  0x10   : > { %s817_s24 = scalar_lea.hbm %s1014_s0, %s522_s21  ;;  %s120_s26 = sshll.u32 %s114_s25, 4  ;;  %s821_s26 = int_to_ptr.vmem [resolvable:$true] %s120_s26 }
  0x11   : > { %p823_p8 = pnand %p574_p6, %p35_p4  ;;  %s111_s28 = scalar_lea.sflag [#allocation3], %s808_s19 }
  0x12   : > { %s632_s29 = scalar_lea.hbm %s817_s24, 512  ;;  %s637_s4 = scalar_lea.hbm %s1014_s0, 1536 }
  0x13   : > { %p633_p9 = scmp.ne.s32.totalorder %s817_s24, %s632_s29  ;;  %p634_p10 = pneg %p823_p8 }
  0x14   : > { %p638_p13 = scmp.lt.s32.totalorder %s817_s24, %s1014_s0  ;;  %p639_p0 = scmp.lt.s32.totalorder %s637_s4, %s632_s29 }
  0x15   : > { %p635_p11 = pnand %p634_p10, %p633_p9 }
  0x16   : > { %p640_p1 = por %p639_p0, %p638_p13 }
  0x17   : > { %p636_p12 = pneg %p635_p11 }
  0x19   : > { %p641_p2 = pnand %p640_p1, %p636_p12 }
  0x1b   : > { %644 = shalt.err (!%p641_p2)
}
  0x1c   : > { %s645_s7 = scalar_lea.vmem %s821_s26, 512  ;;  %s742_s8 = smov [#allocation2]  }
  0x1d   : > { %p646_p3 = scmp.ne.s32.totalorder %s821_s26, %s645_s7  ;;  %s650_s9 = sshll.u32 %s742_s8, 4  ;;  %s651_s9 = int_to_ptr.vmem [resolvable:$false] %s650_s9 }
  0x1e   : > { %s652_s15 = scalar_lea.vmem %s651_s9, 1024  ;;  %p653_p9 = scmp.lt.s32.totalorder %s821_s26, %s651_s9 }
  0x1f   : > { %p648_p4 = pnand %p646_p3, %p634_p10  ;;  %p654_p11 = scmp.lt.s32.totalorder %s652_s15, %s645_s7 }
  0x21   : > { %p649_p6 = pneg %p648_p4  ;;  %p655_p5 = por %p654_p11, %p653_p9 }
  0x23   : > { %p656_p13 = pnand %p655_p5, %p649_p6 }
  0x25   : > { %659 = shalt.err (!%p656_p13)
}
  0x26   : > { %s743_s16 = smov 384   ;;  %s744_s22 = smov 128  }
  0x27   : > { %s745_s23 = smov 8   ;;  %p525_p5 = scmp.ge.s32.totalorder %s740_s12, 1 }
  0x28   : > { %570 = dma.hbm_to_vmem [thread:$0]  (!%p823_p8), %s817_s24, 512, %s821_s26, %s111_s28, %s743_s16, %s744_s22, %s745_s23  }
  0x29   : > { %p148_p12 = scmp.lt.s32.totalorder %s740_s12, 4  ;;  %s868_s3 = scalar_lea.hbm %s1015_s1, %s522_s21 }
  0x2a   : > { %s134_s4 = scalar_lea.vmem [#allocation5], %s521_s20  ;;  %s131_s24 = scalar_lea.sflag [#allocation6], %s808_s19 }
  0x2b   : > { %p859_p0 = pnand %p525_p5, %p148_p12  ;;  %s140_s5 = sshll.u32 %s134_s4, 4  ;;  %s872_s5 = int_to_ptr.vmem [resolvable:$true] %s140_s5 }
  0x2c   : > { %s660_s26 = scalar_lea.hbm %s868_s3, 512  ;;  %s665_s21 = scalar_lea.hbm %s1015_s1, 1536 }
  0x2d   : > { %p661_p1 = scmp.ne.s32.totalorder %s868_s3, %s660_s26  ;;  %p666_p4 = scmp.lt.s32.totalorder %s868_s3, %s1015_s1 }
  0x2e   : > { %p667_p6 = scmp.lt.s32.totalorder %s665_s21, %s660_s26 }
  0x2f   : > { %p663_p2 = pnand %p661_p1, %p634_p10 }
  0x30   : > { %p668_p9 = por %p667_p6, %p666_p4 }
  0x31   : > { %p664_p3 = pneg %p663_p2 }
  0x33   : > { %p669_p11 = pnand %p668_p9, %p664_p3 }
  0x35   : > { %672 = shalt.err (!%p669_p11)
}
  0x36   : > { %s673_s19 = scalar_lea.vmem %s872_s5, 512  ;;  %s746_s20 = smov [#allocation5]  }
  0x37   : > { %p674_p13 = scmp.ne.s32.totalorder %s872_s5, %s673_s19  ;;  %s678_s8 = sshll.u32 %s746_s20, 4  ;;  %s679_s8 = int_to_ptr.vmem [resolvable:$false] %s678_s8 }
  0x38   : > { %s680_s9 = scalar_lea.vmem %s679_s8, 1024  ;;  %p681_p1 = scmp.lt.s32.totalorder %s872_s5, %s679_s8 }
  0x39   : > { %p676_p5 = pnand %p674_p13, %p634_p10  ;;  %p682_p2 = scmp.lt.s32.totalorder %s680_s9, %s673_s19 }
  0x3b   : > { %p677_p12 = pneg %p676_p5  ;;  %p683_p7 = por %p682_p2, %p681_p1 }
  0x3d   : > { %p684_p4 = pnand %p683_p7, %p677_p12 }
  0x3f   : > { %687 = shalt.err (!%p684_p4)
}
  0x40   : > { %573 = dma.hbm_to_vmem [thread:$0]  (!%p823_p8), %s868_s3, 512, %s872_s5, %s131_s24, %s743_s16, %s744_s22, %s745_s23  }
  0x41   : > { %152 = sbr.rel (%p859_p0) target bundleno = 344 (0x158), region = 28  ;;  %s154_s15 = sand.u32 (!%p859_p0), 1, %s732_s10  }
  0x42   : > { %s526_s29 = sshll.u32 (!%p859_p0), %s154_s15, 5  ;;  %s155_s30 = scalar_lea.sflag (!%p859_p0), [#allocation3], %s154_s15 }
  0x43   : > { %s158_s4 = scalar_lea.vmem (!%p859_p0), [#allocation2], %s526_s29  ;;  %p1022_p10 = scmp.ne.s32.totalorder (!%p859_p0), %s1019_s18, 0 }
  0x46   : > { %715 = dma.done.wait (%p1022_p10), %s155_s30, 512  }
  0x47   : > { %717 = vsyncadd (%p1022_p10), %s155_s30, 4294966784  ;;  %s164_s27 = scalar_lea.sflag [#allocation6], %s154_s15  ;;  %s907_s26 = scalar_lea.vmem [#allocation5], %s526_s29 }
  0x48   : > { %719 = dma.done.wait (%p1022_p10), %s164_s27, 512  }
  0x49   : > { %721 = vsyncadd (%p1022_p10), %s164_s27, 4294966784  ;;  %v216_v0 = vlaneseq  ;;  %v915_v2 = vld [vmem:[%s158_s4] sm:$0xff]  ;;  %v921_v4 = vld [vmem:[%s907_s26 + $0x18] sm:$0x3]  ;;  %v747_v8 = vmov 0.0   ;;  %vm259_vm1 = vcmask 1041408  }
  0x4a   : > { %v918_v3 = vld [vmem:[%s907_s26] sm:$0xff]  ;;  %v228_v5 = vrot.slane %v921_v4, 5  ;;  %v231_v10 = vand.u32 2147483647, %v915_v2  ;;  %v931_v11 = vld [vmem:[%s158_s4 + $0x8] sm:$0xff]  ;;  %v933_v12 = vld [vmem:[%s158_s4 + $0x10] sm:$0xff] }
  0x4b   : > { %v913_v1 = vshrl.u32 %v216_v0, 7  ;;  %vm224_vm0 = vcmp.eq.f32.partialorder %v918_v3, 1.0  ;;  %v270_v7 = vsub.f32 %v915_v2, %v918_v3  ;;  %v936_v15 = vld [vmem:[%s158_s4 + $0x18] sm:$0x1]  ;;  %v301_v18 = vand.u32 2147483647, %v931_v11 }
  0x4c   : > { %v928_v9 = vsel %vm224_vm0, 1.0, %v747_v8  ;;  %v232_v16 = vsub.f32 0.0, %v231_v10  ;;  %v302_v19 = vand.u32 2147483647, %v933_v12  ;;  %v303_v21 = vand.u32 2147483647, %v936_v15 }
  0x4d   : > { %v256_v6 = vsub.s32 4, %v913_v1  ;;  %v230_v13 = vmul.f32 %v928_v9, %v228_v5  ;;  %v271_v14 = vmul.f32 %v270_v7, %v270_v7  ;;  %v304_v23 = vsub.f32 0.0, %v301_v18  ;;  %s529_s18 = sshll.u32 %s784_s13, 7  ;;  %v213_v54 = vld [vmem:[%s907_s26 + $0x8] sm:$0xff]  ;;  %v960_v55 = vld [vmem:[%s907_s26 + $0x10] sm:$0xff]  ;;  %s748_s16 = smov 0.0  }
  0x4e   : > { %v233_v20 = vmul.f32 1.442695, %v232_v16  ;;  %v305_v24 = vsub.f32 0.0, %v302_v19  ;;  %v306_v25 = vsub.f32 0.0, %v303_v21  ;;  %v217_v37 = vand.u32 127, %v216_v0  ;;  %p1023_p7 = scmp.eq.s32.totalorder %s784_s13, 0 }
  0x4f   : > { %v940_v17 = vrot.slane %v230_v13, %v256_v6  ;;  %v307_v27 = vmul.f32 1.442695, %v304_v23  ;;  %v219_v39 = vstv %s529_s18  ;;  %v238_v42 = vsub.f32 0.0, %v915_v2  ;;  %p576_p5 = scmp.eq.s32.totalorder %s784_s13, 2  ;;  %s749_s15 = smov [#allocation7]  }
  0x50   : > { %616 = vpow2.f32 %v233_v20  ;;  %v309_v28 = vmul.f32 1.442695, %v305_v24  ;;  %v311_v29 = vmul.f32 1.442695, %v306_v25  ;;  %v220_v41 = vadd.s32 %v219_v39, %v217_v37  ;;  %555 = sst [smem:[#allocation7]] (%p1023_p7), %s748_s16  ;;  %p1024_p8 = pmov %p1023_p7 }
  0x51   : > { %v272_v22 = vmul.f32 %v271_v14, %v940_v17  ;;  %618 = vpow2.f32 %v307_v27  ;;  %v322_v43 = vsub.f32 0.0, %v931_v11  ;;  %v323_v44 = vsub.f32 0.0, %v933_v12  ;;  %p1025_p0 = pmov %p1023_p7  ;;  %s419_s22 = sld [smem:[#allocation7]] }
  0x52   : > { %620 = vpow2.f32 %v309_v28  ;;  %vm221_vm2 = vcmp.lt.s32.totalorder %v220_v41, 384  ;;  %v239_v45 = vmax.f32 %v238_v42, 0.0  ;;  %v244_v46 = vmax.f32 %v915_v2, 0.0  ;;  %556 = sst [smem:[#allocation7 + $0x1]] (%p1024_p8), %s748_s16 }
  0x53   : > { %v274_v26 = vrot.slane %v272_v22, 2  ;;  %622 = vpow2.f32 %v311_v29  ;;  %v324_v47 = vsub.f32 0.0, %v936_v15  ;;  %v357_v49 = vsub.f32 0.0, %v921_v4  ;;  %557 = sst [smem:[#allocation7 + $0x2]] (%p1025_p0), %s748_s16  ;;  %p1026_p3 = pmov %p1025_p0 }
  0x54   : > { %v954_v50 = vsel %vm221_vm2, 1.0, %v747_v8  ;;  %v363_v51 = vsub.f32 1.0, %v921_v4  ;;  %v249_v53 = vsub.f32 0.0, %v918_v3  ;;  %v251_v56 = vsub.f32 1.0, %v918_v3  ;;  %p1027_p6 = pmov %p1025_p0  ;;  %p1028_p9 = pmov %p1025_p0 }
  0x55   : > { %v276_v30 = vsel %vm259_vm1, %v274_v26, 0.0  ;;  %v325_v57 = vmax.f32 %v322_v43, 0.0  ;;  %v326_v58 = vmax.f32 %v323_v44, 0.0  ;;  %v340_v59 = vmax.f32 %v931_v11, 0.0  ;;  %558 = sst [smem:[#allocation7 + $0x3]] (%p1026_p3), %s748_s16  ;;  %p1029_p11 = pmov %p1025_p0 }
  0x56   : > { %277 = vadd.xlane.f32.xlu0 %v276_v30  ;;  %v327_v63 = vmax.f32 %v324_v47, 0.0  ;;  %v341_v0 = vmax.f32 %v933_v12, 0.0  ;;  %v342_v7 = vmax.f32 %v936_v15, 0.0  ;;  %v355_v8 = vsub.f32 0.0, %v213_v54  ;;  %559 = sst [smem:[#allocation7 + $0x4]] (%p1027_p6), %s748_s16  ;;  %p1030_p13 = pmov %p1025_p0 }
  0x57   : > { %v356_v10 = vsub.f32 0.0, %v960_v55  ;;  %v361_v18 = vsub.f32 1.0, %v213_v54  ;;  %v362_v21 = vsub.f32 1.0, %v960_v55  ;;  %vm290_vm3 = vcmask 1040384   ;;  %560 = sst [smem:[#allocation7 + $0x5]] (%p1028_p9), %s748_s16 }
  0x58   : > { %vm382_vm4 = vcmask 1042432   ;;  %vm394_vm5 = vcmask 1043456   ;;  %561 = sst [smem:[#allocation7 + $0x6]] (%p1029_p11), %s748_s16 }
  0x59   : > { %562 = sst [smem:[#allocation7 + $0x7]] (%p1030_p13), %s748_s16 }
  0x5a   : > { %s532_s23 = sld [smem:[#allocation7 + $0x1]] }
  0x5b   : > { %s533_s25 = sld [smem:[#allocation7 + $0x2]] }
  0x5c   : > { %s534_s3 = sld [smem:[#allocation7 + $0x3]] }
  0x5d   : > { %v617_v31 = vpop.eup %616  ;;  %s535_s24 = sld [smem:[#allocation7 + $0x4]] }
  0x5e   : > { %v235_v32 = vadd.f32 1.0, %v617_v31  ;;  %v619_v33 = vpop.eup %618 }
  0x5f   : > { %v621_v34 = vpop.eup %620  ;;  %v313_v35 = vadd.f32 1.0, %v619_v33 }
  0x60   : > { %624 = vlog2.f32 %v235_v32  ;;  %v623_v36 = vpop.eup %622  ;;  %v314_v38 = vadd.f32 1.0, %v621_v34 }
  0x61   : > { %v315_v40 = vadd.f32 1.0, %v623_v36  ;;  %626 = vlog2.f32 %v313_v35 }
  0x62   : > { %628 = vlog2.f32 %v314_v38 }
  0x63   : > { %630 = vlog2.f32 %v315_v40  ;;  %v373_v40 = vrot.slane %v928_v9, %v256_v6 }
  0x6d   : > { %v625_v48 = vpop.eup %624 }
  0x6e   : > { %v237_v52 = vmul.f32 0.6931472, %v625_v48  ;;  %v627_v60 = vpop.eup %626  ;;  %v407_v48 = vrot.slane %v928_v9, 4 }
  0x6f   : > { %v629_v2 = vpop.eup %628  ;;  %v317_v5 = vmul.f32 0.6931472, %v627_v60 }
  0x70   : > { %v240_v61 = vadd.f32 %v239_v45, %v237_v52  ;;  %v245_v62 = vadd.f32 %v244_v46, %v237_v52  ;;  %v631_v13 = vpop.eup %630  ;;  %v319_v16 = vmul.f32 0.6931472, %v629_v2 }
  0x71   : > { %v321_v19 = vmul.f32 0.6931472, %v631_v13  ;;  %v328_v11 = vadd.f32 %v325_v57, %v317_v5  ;;  %v343_v20 = vadd.f32 %v340_v59, %v317_v5 }
  0x72   : > { %v241_v14 = vsub.f32 0.0, %v240_v61  ;;  %v246_v3 = vsub.f32 0.0, %v245_v62  ;;  %v329_v12 = vadd.f32 %v326_v58, %v319_v16  ;;  %v344_v24 = vadd.f32 %v341_v0, %v319_v16 }
  0x73   : > { %v330_v25 = vadd.f32 %v327_v63, %v321_v19  ;;  %v331_v15 = vsub.f32 0.0, %v328_v11  ;;  %v345_v26 = vadd.f32 %v342_v7, %v321_v19  ;;  %v346_v27 = vsub.f32 0.0, %v343_v20 }
  0x74   : > { %v242_v22 = vmax.f32 %v241_v14, -16.118095  ;;  %v247_v23 = vmax.f32 %v246_v3, -16.118095  ;;  %v332_v30 = vsub.f32 0.0, %v329_v12  ;;  %v347_v31 = vsub.f32 0.0, %v344_v24 }
  0x75   : > { %v333_v32 = vsub.f32 0.0, %v330_v25  ;;  %v334_v33 = vmax.f32 %v331_v15, -16.118095  ;;  %v348_v34 = vsub.f32 0.0, %v345_v26  ;;  %v349_v35 = vmax.f32 %v346_v27, -16.118095 }
  0x76   : > { %v243_v28 = vmin.f32 %v242_v22, -1.0000001e-07  ;;  %v248_v29 = vmin.f32 %v247_v23, -1.0000001e-07  ;;  %v335_v38 = vmax.f32 %v332_v30, -16.118095 }
  0x77   : > { %v350_v39 = vmax.f32 %v347_v31, -16.118095  ;;  %v336_v41 = vmax.f32 %v333_v32, -16.118095  ;;  %v337_v42 = vmin.f32 %v334_v33, -1.0000001e-07 }
  0x78   : > { %v250_v36 = vmul.f32 %v249_v53, %v243_v28  ;;  %v252_v37 = vmul.f32 %v251_v56, %v248_v29  ;;  %v351_v43 = vmax.f32 %v348_v34, -16.118095  ;;  %v338_v45 = vmin.f32 %v335_v38, -1.0000001e-07 }
  0x79   : > { %v352_v46 = vmin.f32 %v349_v35, -1.0000001e-07  ;;  %v353_v47 = vmin.f32 %v350_v39, -1.0000001e-07  ;;  %v339_v52 = vmin.f32 %v336_v41, -1.0000001e-07  ;;  %v358_v55 = vmul.f32 %v355_v8, %v337_v42 }
  0x7a   : > { %v253_v44 = vsub.f32 %v250_v36, %v252_v37  ;;  %v354_v54 = vmin.f32 %v351_v43, -1.0000001e-07  ;;  %v359_v57 = vmul.f32 %v356_v10, %v338_v45 }
  0x7b   : > { %v364_v1 = vmul.f32 %v361_v18, %v352_v46  ;;  %v360_v6 = vmul.f32 %v357_v49, %v339_v52  ;;  %v365_v58 = vmul.f32 %v362_v21, %v353_v47 }
  0x7c   : > { %v258_v53 = vmul.f32 %v940_v17, %v253_v44  ;;  %v286_v56 = vmul.f32 %v954_v50, %v253_v44  ;;  %v366_v59 = vmul.f32 %v363_v51, %v354_v54  ;;  %v374_v60 = vmul.f32 %v373_v40, %v253_v44 }
  0x7d   : > { %v367_v62 = vsub.f32 %v358_v55, %v364_v1  ;;  %v368_v63 = vsub.f32 %v359_v57, %v365_v58  ;;  %v409_v50 = vsel %vm290_vm3, %v407_v48, 0.0 }
  0x7e   : > { %v260_v61 = vsel %vm259_vm1, %v258_v53, 0.0  ;;  %v288_v9 = vrot.slane %v286_v56, 4  ;;  %v369_v0 = vsub.f32 %v360_v6, %v366_v59  ;;  %v383_v5 = vrot.slane %v374_v60, 5 }
  0x7f   : > { %261 = vadd.xlane.f32.xlu0 %v260_v61  ;;  %v375_v2 = vmul.f32 %v373_v40, %v367_v62  ;;  %v376_v49 = vmul.f32 %v373_v40, %v368_v63 }
  0x80   : > { %v291_v17 = vsel %vm290_vm3, %v288_v9, 0.0  ;;  %v377_v7 = vmul.f32 %v373_v40, %v369_v0 }
  0x81   : > { %292 = vadd.xlane.f32.xlu1 %v291_v17  ;;  %v384_v4 = vrot.slane %v375_v2, 5  ;;  %v386_v51 = vrot.slane %v376_v49, 5 }
  0x82   : > { %v388_v8 = vrot.slane %v377_v7, 5 }
  0x83   : > { %410 = vadd.xlane.f32.xlu0 %v409_v50  ;;  %v385_v10 = vsel %vm382_vm4, %v383_v5, %v384_v4  ;;  %v387_v13 = vsel %vm382_vm4, %v384_v4, %v386_v51 }
  0x84   : > { %v389_v14 = vsel %vm382_vm4, %v386_v51, %v388_v8  ;;  %v393_v3 = vadd.f32 %v387_v13, %v385_v10 }
  0x85   : > { %v395_v16 = vsel %vm394_vm5, %v389_v14, 0.0 }
  0x86   : > { %v396_v18 = vadd.f32 %v395_v16, %v393_v3 }
  0x88   : > { %397 = vadd.xlane.f32.xlu1 %v396_v18 }
  0xdf   : > { %v278_v19 = vpop.xlane.xlu0 %277 }
  0xe0   : > { %v279_v11 = vrot.slane %v278_v19, 4 }
  0xe2   : > { %v280_v20 = vadd.f32 %v279_v11, %v278_v19 }
  0xe4   : > { %v281_v21 = vrot.slane %v280_v20, 2 }
  0xe6   : > { %v282_v26 = vadd.f32 %v281_v21, %v280_v20 }
  0xe8   : > { %v283_v33 = vrot.slane %v282_v26, 1 }
  0xea   : > { %v284_v41 = vadd.f32 %v283_v33, %v282_v26 }
 0x108   : > { %v262_v22 = vpop.xlane.xlu0 %261 }
 0x109   : > { %v263_v23 = vrot.slane %v262_v22, 4 }
 0x10a   : > { %v293_v12 = vpop.xlane.xlu1 %292 }
 0x10b   : > { %v264_v24 = vadd.f32 %v263_v23, %v262_v22  ;;  %v294_v25 = vrot.slane %v293_v12, 4 }
 0x10c   : > { %v411_v15 = vpop.xlane.xlu0 %410 }
 0x10d   : > { %v265_v27 = vrot.slane %v264_v24, 2  ;;  %v295_v28 = vadd.f32 %v294_v25, %v293_v12  ;;  %v412_v29 = vrot.slane %v411_v15, 4 }
 0x10f   : > { %v296_v30 = vrot.slane %v295_v28, 2  ;;  %v413_v31 = vadd.f32 %v412_v29, %v411_v15  ;;  %v266_v32 = vadd.f32 %v265_v27, %v264_v24 }
 0x111   : > { %v267_v34 = vrot.slane %v266_v32, 1  ;;  %v297_v35 = vadd.f32 %v296_v30, %v295_v28  ;;  %v414_v36 = vrot.slane %v413_v31, 2  ;;  %v398_v37 = vpop.xlane.xlu1 %397 }
 0x112   : > { %v399_v40 = vrot.slane %v398_v37, 4 }
 0x113   : > { %v268_v38 = vadd.f32 %v267_v34, %v266_v32  ;;  %v298_v39 = vrot.slane %v297_v35, 1  ;;  %v415_v44 = vadd.f32 %v414_v36, %v413_v31 }
 0x114   : > { %v400_v43 = vadd.f32 %v399_v40, %v398_v37 }
 0x115   : > { %540 = vpush %v268_v38  ;;  %v299_v42 = vadd.f32 %v298_v39, %v297_v35  ;;  %v416_v47 = vrot.slane %v415_v44, 1 }
 0x116   : > { %542 = vpush %v284_v41  ;;  %v401_v45 = vrot.slane %v400_v43, 2 }
 0x117   : > { %544 = vpush %v299_v42  ;;  %v417_v54 = vadd.f32 %v416_v47, %v415_v44 }
 0x118   : > { %v402_v46 = vadd.f32 %v401_v45, %v400_v43 }
 0x11a   : > { %v403_v48 = vrot.slane %v402_v46, 1 }
 0x11c   : > { %v404_v52 = vadd.f32 %v403_v48, %v402_v46 }
 0x11e   : > { %546 = vpush %v404_v52 }
 0x11f   : > { %548 = vpush %v417_v54 }
 0x146   : > { %s541_s5 = spop %540 }
 0x147   : > { %s420_s12 = sadd.f32 %s541_s5, %s419_s22  ;;  %s543_s28 = spop %542 }
 0x148   : > { %s424_s21 = sadd.f32 %s543_s28, %s532_s23  ;;  %s545_s6 = spop %544 }
 0x149   : > { %422 = sst [smem:[#allocation7]] %s420_s12 }
 0x14a   : > { %426 = sst [smem:[#allocation7 + $0x1]] %s424_s21 }
 0x14b   : > { %s428_s7 = sadd.f32 %s545_s6, %s533_s25 }
 0x14d   : > { %430 = sst [smem:[#allocation7 + $0x2]] %s428_s7 }
 0x14f   : > { %s547_s19 = spop %546 }
 0x150   : > { %s432_s20 = sadd.f32 %s547_s19, %s534_s3  ;;  %s549_s8 = spop %548 }
 0x151   : > { %s436_s9 = sadd.f32 %s549_s8, %s535_s24 }
 0x152   : > { %434 = sst [smem:[#allocation7 + $0x3]] %s432_s20 }
 0x153   : > { %438 = sst [smem:[#allocation7 + $0x4]] %s436_s9 }
 0x154   : > { %564 = dma.smem_to_hbm (%p576_p5), %s749_s15, 16, %s1016_s2, [#allocation4]  }
 0x155   : > { %723 = dma.done.wait (%p576_p5), [#allocation4], 16  }
 0x156   : > { %725 = vsyncadd (%p576_p5), [#allocation4], 4294967280 }
 0x157   : > { %452 = sfence }
 0x158 PF: > { %p16_p12 = scmp.ge.s32.totalorder %s787_s14, 5   ;;  %s1031_s9 = smov %s732_s10 }
 0x159   : > { %s1032_s10 = smov %s736_s11  ;;  %s1033_s11 = smov %s797_s17 }
 0x15a   : > { %s1034_s12 = smov %s787_s14  ;;  %18 = sbr.rel (!%p16_p12) target bundleno = 6 (0x6), region = 95 }
 0x15f   :  { %458 = vsyncpa [#allocation3], 1 }
 0x160   :  { %460 = vsyncpa [#allocation3 + $0x1], 1 }
 0x161   :  { %461 = vsyncpa [#allocation6], 1 }
 0x162   :  { %463 = vsyncpa [#allocation6 + $0x1], 1 }
 0x163   :  { %464 = vsyncpa [#allocation4], 1 }
 0x164   :  { %466 = vsyncpa [#allocation4 + $0x1], 1 }

</bundles_post_ra>
